<compile_context>
chip_gen: v6e
topology: v6e:2x2x1
jax: 0.10.0
libtpu: 0.0.40
codegen_flags: <defaults>
</compile_context>

<pallas_src>
import math

import jax
import jax.numpy as jnp
from jax.experimental import pallas as pl
from jax.experimental.pallas import tpu as pltpu


def _row_tile_multiple(dtype):
    """Sublane-pack-aware row granularity: f32 -> 8, bf16/f16 -> 16, int8 -> 32."""
    itemsize = jnp.dtype(dtype).itemsize
    if itemsize >= 4:
        return 8
    if itemsize == 2:
        return 16
    return 32


def _vmem_params():
    """(tile_budget_bytes, vmem_limit_bytes) sized per TPU generation.

    v7x has 64 MiB physical VMEM per TensorCore -> keep the double-buffered
    footprint around ~40 MiB.  v5e/v6e have 128 MiB -> budget ~96 MiB so this
    memory-bound copy runs in the large-tile (near-roofline) regime.
    """
    cap = 64 << 20  # conservative default if the query fails
    try:
        cap = int(pltpu.get_tpu_info().vmem_capacity_bytes)
    except Exception:
        pass
    if cap <= (64 << 20):
        return 40 << 20, 56 << 20
    return 96 << 20, 112 << 20


def _choose_row_tile(M, total_width, itemsize, mult, budget):
    """Row-tile size (multiple of `mult`), capped so the double-buffered
    input + output tiles (~4 * total_width * itemsize bytes per row) fit in
    `budget`, while keeping >= 4 grid steps for pipelining / megacore."""
    if M <= mult:
        return M  # full extent is always a legal block shape
    bytes_per_row = 4 * total_width * itemsize  # 2x input bufs + 2x output bufs
    max_rows = max(mult, (budget // max(1, bytes_per_row)) // mult * mult)
    min_tiles = 4
    target = -(-M // min_tiles)            # ceil(M / min_tiles)
    target = -(-target // mult) * mult     # round up to a multiple of mult
    tm = max(mult, min(max_rows, target))
    if tm >= M:
        return M
    return tm


def make_concat(col_widths, n_rows, dtype):
    """pallas_call concatenating len(col_widths) 2D slabs of shape (n_rows, L_i)
    into one (n_rows, sum(L_i)) slab."""
    col_widths = tuple(int(w) for w in col_widths)
    total = sum(col_widths)
    itemsize = jnp.dtype(dtype).itemsize
    budget, vmem_limit = _vmem_params()
    mult = _row_tile_multiple(dtype)
    tm = _choose_row_tile(n_rows, total, itemsize, mult, budget)
    grid = (pl.cdiv(n_rows, tm),)  # ragged last block is clamped by Pallas

    def concat_kernel(*refs):
        in_refs, o_ref = refs[:-1], refs[-1]
        off = 0
        for r, width in zip(in_refs, col_widths):
            # Static column slice -> plain vector loads/stores into the
            # lane-dense output tile; pure copy, no MXU/XLU work.
            # TODO(synk): for segment widths/offsets that are not multiples of
            # 128 lanes this emits masked partial stores; a per-segment DMA to
            # an HBM-resident output would avoid that (worst on v5e's single
            # store slot).
            o_ref[:, off:off + width] = r[...]
            off += width

    in_specs = [pl.BlockSpec((tm, w), lambda i: (i, 0)) for w in col_widths]
    out_spec = pl.BlockSpec((tm, total), lambda i: (i, 0))

    return pl.pallas_call(
        concat_kernel,
        out_shape=jax.ShapeDtypeStruct((n_rows, total), dtype),
        grid=grid,
        in_specs=in_specs,
        out_specs=out_spec,
        compiler_params=pltpu.CompilerParams(
            dimension_semantics=("parallel",),
            vmem_limit_bytes=vmem_limit,
        ),
        cost_estimate=pl.CostEstimate(
            flops=0,
            transcendentals=0,
            bytes_accessed=2 * n_rows * total * itemsize,
        ),
    )


def concat(inputs, dim=-1, *, min_pallas_bytes=1 << 20):
    """Equivalent of torch.cat(inputs, dim).

    For very small outputs the fixed pallas_call / pipeline setup overhead
    dominates, so we fall back to XLA's native concatenate.  Pass
    min_pallas_bytes=0 to force the Pallas kernel.
    """
    assert len(inputs) >= 1
    shapes = [tuple(x.shape) for x in inputs]
    ndim = len(shapes[0])
    d = dim % ndim
    dtype = inputs[0].dtype
    for x, s in zip(inputs, shapes):
        assert len(s) == ndim, "all inputs must have the same rank"
        assert s[:d] == shapes[0][:d] and s[d + 1:] == shapes[0][d + 1:], (
            "all input dims must match except along the concat dim")
        assert x.dtype == dtype, "all inputs must share a dtype"

    M = math.prod(shapes[0][:d])
    T = math.prod(shapes[0][d + 1:])
    widths = [s[d] * T for s in shapes]
    total = sum(widths)
    itemsize = jnp.dtype(dtype).itemsize

    if M * total * itemsize < min_pallas_bytes:
        return jnp.concatenate(inputs, axis=d)

    # Free (contiguous, row-major) reshapes to lane-dense 2D views, and back.
    xs2d = [x.reshape(M, w) for x, w in zip(inputs, widths)]
    out2d = make_concat(widths, M, dtype)(*xs2d)

    out_shape = list(shapes[0])
    out_shape[d] = sum(s[d] for s in shapes)
    return out2d.reshape(out_shape)


class Concat:
    """Mirror of the PyTorch module: concatenates inputs along a dimension."""

    def __init__(self, dim=-1, **kwargs):
        self.dim = dim

    def __call__(self, inputs, **kwargs):
        return concat(inputs, dim=self.dim, **kwargs)


if __name__ == "__main__":
    key = jax.random.PRNGKey(0)
    k0, k1, k2 = jax.random.split(key, 3)

    # Small NCHW-style inputs, concat along the module's default dim=-1.
    x0 = jax.random.normal(k0, (2, 4, 16, 16), dtype=jnp.float32)
    x1 = jax.random.normal(k1, (2, 4, 16, 8), dtype=jnp.float32)
    x2 = jax.random.normal(k2, (2, 4, 16, 32), dtype=jnp.float32)

    # Force the Pallas kernel path even at test-sized inputs.
    out = concat([x0, x1, x2], dim=-1, min_pallas_bytes=0)
    out = jax.block_until_ready(out)
    ref = jnp.concatenate([x0, x1, x2], axis=-1)
    assert out.shape == ref.shape and out.dtype == ref.dtype
    assert jnp.array_equal(out, ref), "concat kernel mismatch (dim=-1)"

    # Also exercise a non-trailing concat dim (channel concat, dim=1).
    y0 = jax.random.normal(k0, (2, 4, 16, 16), dtype=jnp.float32)
    y1 = jax.random.normal(k1, (2, 6, 16, 16), dtype=jnp.float32)
    out2 = jax.block_until_ready(concat([y0, y1], dim=1, min_pallas_bytes=0))
    ref2 = jnp.concatenate([y0, y1], axis=1)
    assert jnp.array_equal(out2, ref2), "concat kernel mismatch (dim=1)"

    # bf16 path (dtype-aware row tiling) and the module-style wrapper.
    z0 = x0.astype(jnp.bfloat16)
    z1 = x1.astype(jnp.bfloat16)
    mod = Concat(dim=-1)
    out3 = jax.block_until_ready(mod([z0, z1], min_pallas_bytes=0))
    ref3 = jnp.concatenate([z0, z1], axis=-1)
    assert jnp.array_equal(out3, ref3), "concat kernel mismatch (bf16)"

    print("KERNEL_OK")
</pallas_src>

<mosaic_0001>
module attributes {stable_mosaic.version = 11 : i64} {
  func.func @concat_kernel(%arg0: i32, %arg1: memref<32x16xf32, #tpu.memory_space<vmem>>, %arg2: memref<32x8xf32, #tpu.memory_space<vmem>>, %arg3: memref<32x32xf32, #tpu.memory_space<vmem>>, %arg4: memref<32x56xf32, #tpu.memory_space<vmem>>) attributes {dimension_semantics = [#tpu.dimension_semantics<parallel>], iteration_bounds = array<i64: 4>, scalar_prefetch = 0 : i64, scratch_operands = 0 : i64, tpu.core_type = #tpu.core_type<tc>, window_params = [{transform_indices = @transform_0, window_bounds = array<i64: 32, 16>}, {transform_indices = @transform_1, window_bounds = array<i64: 32, 8>}, {transform_indices = @transform_2, window_bounds = array<i64: 32, 32>}, {transform_indices = @transform_3, window_bounds = array<i64: 32, 56>}]} {
    %c0 = arith.constant 0 : index
    %c0_0 = arith.constant 0 : index
    %0 = vector.load %arg1[%c0, %c0_0] : memref<32x16xf32, #tpu.memory_space<vmem>>, vector<32x16xf32>
    %c0_1 = arith.constant 0 : index
    %c0_2 = arith.constant 0 : index
    %1 = vector.load %arg4[%c0_1, %c0_2] : memref<32x56xf32, #tpu.memory_space<vmem>>, vector<32x16xf32>
    tpu.vector_store %arg4[%c0_1, %c0_2], %0 {strides = array<i32>} : memref<32x56xf32, #tpu.memory_space<vmem>>, vector<32x16xf32>,
    %c0_3 = arith.constant 0 : index
    %c0_4 = arith.constant 0 : index
    %2 = vector.load %arg2[%c0_3, %c0_4] : memref<32x8xf32, #tpu.memory_space<vmem>>, vector<32x8xf32>
    %c0_5 = arith.constant 0 : index
    %c16 = arith.constant 16 : index
    %3 = vector.load %arg4[%c0_5, %c16] : memref<32x56xf32, #tpu.memory_space<vmem>>, vector<32x8xf32>
    tpu.vector_store %arg4[%c0_5, %c16], %2 {strides = array<i32>} : memref<32x56xf32, #tpu.memory_space<vmem>>, vector<32x8xf32>,
    %c0_6 = arith.constant 0 : index
    %c0_7 = arith.constant 0 : index
    %4 = vector.load %arg3[%c0_6, %c0_7] : memref<32x32xf32, #tpu.memory_space<vmem>>, vector<32x32xf32>
    %c0_8 = arith.constant 0 : index
    %c24 = arith.constant 24 : index
    %5 = vector.load %arg4[%c0_8, %c24] : memref<32x56xf32, #tpu.memory_space<vmem>>, vector<32x32xf32>
    tpu.vector_store %arg4[%c0_8, %c24], %4 {strides = array<i32>} : memref<32x56xf32, #tpu.memory_space<vmem>>, vector<32x32xf32>,
    return
  }
  func.func @transform_0(%arg0: i32) -> (i32, i32) {
    %c0_i32 = arith.constant 0 : i32
    %c0_i32_0 = arith.constant 0 : i32
    return %arg0, %c0_i32 : i32, i32
  }
  func.func @transform_1(%arg0: i32) -> (i32, i32) {
    %c0_i32 = arith.constant 0 : i32
    %c0_i32_0 = arith.constant 0 : i32
    return %arg0, %c0_i32 : i32, i32
  }
  func.func @transform_2(%arg0: i32) -> (i32, i32) {
    %c0_i32 = arith.constant 0 : i32
    %c0_i32_0 = arith.constant 0 : i32
    return %arg0, %c0_i32 : i32, i32
  }
  func.func @transform_3(%arg0: i32) -> (i32, i32) {
    %c0_i32 = arith.constant 0 : i32
    %c0_i32_0 = arith.constant 0 : i32
    return %arg0, %c0_i32 : i32, i32
  }
}

</mosaic_0001>

<bundles_post_ra>
// kernel: tpu_custom_call.1
= control target key start
LH: loop header
LB: loop body
LE: loop exit
PB: predicated region body
PF: predicated region fallthrough
CT: control target
= control target key end

     0   :  { %s412_s12 = smov 0   ;;  %s449_s0 = inlined_call_operand.vmem [shape: f32[128,16], index: 0, kind: input, shape index: {}]   ;;  %s450_s1 = inlined_call_operand.vmem [shape: f32[128,8], index: 1, kind: input, shape index: {}]   ;;  %s451_s2 = inlined_call_operand.vmem [shape: f32[128,32], index: 2, kind: input, shape index: {}]   ;;  %s452_s3 = inlined_call_operand.vmem [shape: f32[128,56], index: 3, kind: output, shape index: {}]  }
   0x1 LB: > { %s357_s13 = sadd.s32 4294967295, %s388_s12   ;;  %p361_p0 = scmp.ge.s32.totalorder %s388_s12, 1  ;;  %s388_s12 = sphi %s412_s12, %s13_s12  }
   0x2   : > { %p160_p1 = scmp.lt.s32.totalorder %s388_s12, 5 }
   0x4   : > { %p161_p2 = pnand %p361_p0, %p160_p1 }
   0x5   : > { %s362_s14 = sshll.u32 (!%p161_p2), %s357_s13, 2  ;;  %s390_s25 = smov (!%p161_p2), 16  }
   0x6   : > { %164 = sbr.rel (%p161_p2) target bundleno = 143 (0x8f), region = 32  ;;  %p195_p3 = scmp.lt.s32.totalorder (!%p161_p2), %s362_s14, 15 }
   0x7   : > { %s391_s29 = smov (!%p161_p2), 24  }
   0xb   : > { %s454_s14 = smov (!%p195_p3, %s362_s14), 15  ;;  %vm222_vm0 = vcmask 130048   ;;  %vm247_vm1 = vcmask 195712   ;;  %vm272_vm2 = vcmask 457920  }
   0xc   : > { %s363_s15 = sshll.u32 %s454_s14, 3 }
   0xd   : > { %s204_s18 = scalar_lea.vmem %s450_s1, %s363_s15  ;;  %s198_s21 = scalar_lea.vmem %s449_s0, %s363_s15 }
   0xe   : > { %v229_v0 = vld [vmem:[%s204_s18 + $0x10] sm:$0xff]  ;;  %v227_v1 = vld [vmem:[%s204_s18] sm:$0xff]  ;;  %s429_s24 = scalar_lea.vmem %s452_s3, %s363_s15  ;;  %v230_v2 = vld [vmem:[%s204_s18 + $0x18] sm:$0xff]  ;;  %s210_s28 = scalar_lea.vmem %s451_s2, %s363_s15 }
   0xf   : > { %239 = vrot.lane.b32.xlu1 %v229_v0, %s390_s25  ;;  %235 = vrot.lane.b32.xlu0 %v227_v1, %s390_s25  ;;  %v228_v3 = vld [vmem:[%s204_s18 + $0x8] sm:$0xff]  ;;  %v220_v4 = vld [vmem:[%s198_s21 + $0x10] sm:$0xff] }
  0x10   : > { %v218_v5 = vld [vmem:[%s198_s21] sm:$0xff]  ;;  %v221_v6 = vld [vmem:[%s198_s21 + $0x18] sm:$0xff]  ;;  %225 = vst.msk [vmem:[%s429_s24 + $0x10] sm:$0xff] %vm222_vm0, %v220_v4  ;;  %v219_v7 = vld [vmem:[%s198_s21 + $0x8] sm:$0xff] }
  0x11   : > { %223 = vst.msk [vmem:[%s429_s24] sm:$0xff] %vm222_vm0, %v218_v5  ;;  %226 = vst.msk [vmem:[%s429_s24 + $0x18] sm:$0xff] %vm222_vm0, %v221_v6  ;;  %v253_v8 = vld [vmem:[%s210_s28 + $0x8] sm:$0xff]  ;;  %v252_v9 = vld [vmem:[%s210_s28] sm:$0xff] }
  0x12   : > { %224 = vst.msk [vmem:[%s429_s24 + $0x8] sm:$0xff] %vm222_vm0, %v219_v7  ;;  %v255_v10 = vld [vmem:[%s210_s28 + $0x18] sm:$0xff]  ;;  %v254_v11 = vld [vmem:[%s210_s28 + $0x10] sm:$0xff] }
  0x13   : > { %241 = vrot.lane.b32.xlu1 %v230_v2, %s390_s25  ;;  %237 = vrot.lane.b32.xlu0 %v228_v3, %s390_s25 }
  0x17   : > { %262 = vrot.lane.b32.xlu1 %v253_v8, %s391_s29  ;;  %260 = vrot.lane.b32.xlu0 %v252_v9, %s391_s29 }
  0x1b   : > { %266 = vrot.lane.b32.xlu1 %v255_v10, %s391_s29  ;;  %264 = vrot.lane.b32.xlu0 %v254_v11, %s391_s29 }
  0x81   : > { %v240_v12 = vpop.permute.xlu1 %239  ;;  %v236_v13 = vpop.permute.xlu0 %235 }
  0x82   : > { %250 = vst.msk [vmem:[%s429_s24 + $0x10] sm:$0xff] %vm247_vm1, %v240_v12  ;;  %248 = vst.msk [vmem:[%s429_s24] sm:$0xff] %vm247_vm1, %v236_v13 }
  0x85   : > { %v242_v14 = vpop.permute.xlu1 %241  ;;  %v238_v15 = vpop.permute.xlu0 %237 }
  0x86   : > { %251 = vst.msk [vmem:[%s429_s24 + $0x18] sm:$0xff] %vm247_vm1, %v242_v14  ;;  %249 = vst.msk [vmem:[%s429_s24 + $0x8] sm:$0xff] %vm247_vm1, %v238_v15 }
  0x89   : > { %v263_v16 = vpop.permute.xlu1 %262  ;;  %v261_v17 = vpop.permute.xlu0 %260 }
  0x8a   : > { %274 = vst.msk [vmem:[%s429_s24 + $0x8] sm:$0xff] %vm272_vm2, %v263_v16  ;;  %273 = vst.msk [vmem:[%s429_s24] sm:$0xff] %vm272_vm2, %v261_v17 }
  0x8d   : > { %v267_v18 = vpop.permute.xlu1 %266  ;;  %v265_v19 = vpop.permute.xlu0 %264 }
  0x8e   : > { %276 = vst.msk [vmem:[%s429_s24 + $0x18] sm:$0xff] %vm272_vm2, %v267_v18  ;;  %275 = vst.msk [vmem:[%s429_s24 + $0x10] sm:$0xff] %vm272_vm2, %v265_v19 }
  0x8f PF: > { %s13_s12 = sadd.s32 1, %s388_s12  }
  0x90   : > { %p10_p4 = scmp.ge.s32.totalorder %s13_s12, 6  }
  0x92   :  { %12 = sbr.rel (!%p10_p4) target bundleno = 1 (0x1), region = 68 }

</bundles_post_ra>
